<compile_context>
chip_gen: v7x
topology: tpu7x:2x2x1
jax: 0.10.0
libtpu: 0.0.40
codegen_flags: <defaults>
</compile_context>

<pallas_src>
import functools

import jax
import jax.numpy as jnp
from jax.experimental import pallas as pl
from jax.experimental.pallas import tpu as pltpu

input_size = 2
hidden_size = 2
output_size = 1

LANE = 128  # TPU lane width; pad feature dims to this for lane-dense layouts.


def _round_up(x: int, m: int) -> int:
    return ((x + m - 1) // m) * m


def mlp_kernel(x_ref, w1_ref, b1_ref, w2_ref, b2_ref, o_ref):
    # hidden layer: x @ W1 + b1 -> sigmoid   (W1 already [in, hidden], no transpose)
    x = x_ref[...]
    h = jnp.dot(x, w1_ref[...], preferred_element_type=jnp.float32) + b1_ref[...]
    h = jax.nn.sigmoid(h)
    # output layer: h @ W2 + b2 -> sigmoid   (W2 already [hidden, out])
    y = jnp.dot(h, w2_ref[...], preferred_element_type=jnp.float32) + b2_ref[...]
    o_ref[...] = jax.nn.sigmoid(y).astype(o_ref.dtype)


@functools.partial(jax.jit, static_argnames=("block_b",))
def mlp_forward(x, w1, b1, w2, b2, *, block_b: int = 512):
    """x: [B, input_size]; w1: [hidden, in]; b1: [hidden]; w2: [out, hidden]; b2: [out]."""
    B = x.shape[0]

    # Batch tile: multiple of 8 (f32 sublane), capped so 2x double-buffered
    # (x tile + out tile) + resident 128x128 weights stay far under VMEM even on v7x.
    tb = min(block_b, _round_up(B, 8))
    Bp = _round_up(B, tb)

    # Lane-dense padding (done once in the wrapper, fused by XLA).
    f32 = jnp.float32
    xp = jnp.zeros((Bp, LANE), f32).at[:B, :input_size].set(x.astype(f32))
    w1p = jnp.zeros((LANE, LANE), f32).at[:input_size, :hidden_size].set(w1.T.astype(f32))
    b1p = jnp.zeros((1, LANE), f32).at[:, :hidden_size].set(b1.reshape(1, -1).astype(f32))
    w2p = jnp.zeros((LANE, LANE), f32).at[:hidden_size, :output_size].set(w2.T.astype(f32))
    b2p = jnp.zeros((1, LANE), f32).at[:, :output_size].set(b2.reshape(1, -1).astype(f32))

    grid = (Bp // tb,)

    cost = pl.CostEstimate(
        flops=2 * Bp * (LANE * LANE + LANE * LANE),
        transcendentals=Bp * (LANE + LANE),
        bytes_accessed=4 * (Bp * LANE * 2 + 2 * LANE * LANE + 2 * LANE),
    )

    out_padded = pl.pallas_call(
        mlp_kernel,
        out_shape=jax.ShapeDtypeStruct((Bp, LANE), f32),
        grid_spec=pltpu.PrefetchScalarGridSpec(
            num_scalar_prefetch=0,
            grid=grid,
            in_specs=[
                pl.BlockSpec((tb, LANE), lambda i: (i, 0)),    # x tile
                pl.BlockSpec((LANE, LANE), lambda i: (0, 0)),  # W1 (resident)
                pl.BlockSpec((1, LANE), lambda i: (0, 0)),     # b1 (resident)
                pl.BlockSpec((LANE, LANE), lambda i: (0, 0)),  # W2 (resident)
                pl.BlockSpec((1, LANE), lambda i: (0, 0)),     # b2 (resident)
            ],
            out_specs=pl.BlockSpec((tb, LANE), lambda i: (i, 0)),
        ),
        compiler_params=pltpu.CompilerParams(
            dimension_semantics=("parallel",),
        ),
        cost_estimate=cost,
    )(xp, w1p, b1p, w2p, b2p)

    # Slice the lane-dense slab back to the true output width / batch.
    return out_padded[:B, :output_size]


def reference_forward(x, w1, b1, w2, b2):
    h = jax.nn.sigmoid(x @ w1.T + b1)
    return jax.nn.sigmoid(h @ w2.T + b2)


if __name__ == "__main__":
    key = jax.random.PRNGKey(0)
    k_x, k_w1, k_b1, k_w2, k_b2 = jax.random.split(key, 5)

    batch = 8
    x = jax.random.normal(k_x, (batch, input_size), dtype=jnp.float32)

    # Parameter shapes follow nn.Linear convention: weight [out, in], bias [out].
    w1 = jax.random.normal(k_w1, (hidden_size, input_size), dtype=jnp.float32) * 0.5
    b1 = jax.random.normal(k_b1, (hidden_size,), dtype=jnp.float32) * 0.1
    w2 = jax.random.normal(k_w2, (output_size, hidden_size), dtype=jnp.float32) * 0.5
    b2 = jax.random.normal(k_b2, (output_size,), dtype=jnp.float32) * 0.1

    out = mlp_forward(x, w1, b1, w2, b2)
    jax.block_until_ready(out)

    ref = reference_forward(x, w1, b1, w2, b2)
    assert out.shape == (batch, output_size), out.shape
    assert jnp.allclose(out, ref, atol=1e-5, rtol=1e-5), jnp.max(jnp.abs(out - ref))

    print("KERNEL_OK")
</pallas_src>

<mosaic_0001>
module attributes {stable_mosaic.version = 11 : i64} {
  func.func @mlp_kernel(%arg0: i32, %arg1: memref<8x128xf32, #tpu.memory_space<vmem>>, %arg2: memref<128x128xf32, #tpu.memory_space<vmem>>, %arg3: memref<1x128xf32, #tpu.memory_space<vmem>>, %arg4: memref<128x128xf32, #tpu.memory_space<vmem>>, %arg5: memref<1x128xf32, #tpu.memory_space<vmem>>, %arg6: memref<8x128xf32, #tpu.memory_space<vmem>>) attributes {dimension_semantics = [#tpu.dimension_semantics<parallel>], iteration_bounds = array<i64: 1>, scalar_prefetch = 0 : i64, scratch_operands = 0 : i64, tpu.core_type = #tpu.core_type<tc>, window_params = [{transform_indices = @transform_0, window_bounds = array<i64: 8, 128>}, {pipeline_mode = #tpu.pipeline_mode<synchronous>, transform_indices = @transform_1, window_bounds = array<i64: 128, 128>}, {pipeline_mode = #tpu.pipeline_mode<synchronous>, transform_indices = @transform_2, window_bounds = array<i64: 1, 128>}, {pipeline_mode = #tpu.pipeline_mode<synchronous>, transform_indices = @transform_3, window_bounds = array<i64: 128, 128>}, {pipeline_mode = #tpu.pipeline_mode<synchronous>, transform_indices = @transform_4, window_bounds = array<i64: 1, 128>}, {transform_indices = @transform_5, window_bounds = array<i64: 8, 128>}]} {
    %c0 = arith.constant 0 : index
    %c0_0 = arith.constant 0 : index
    %0 = vector.load %arg1[%c0, %c0_0] : memref<8x128xf32, #tpu.memory_space<vmem>>, vector<8x128xf32>
    %c0_1 = arith.constant 0 : index
    %c0_2 = arith.constant 0 : index
    %1 = vector.load %arg2[%c0_1, %c0_2] : memref<128x128xf32, #tpu.memory_space<vmem>>, vector<128x128xf32>
    %cst = arith.constant dense<0.000000e+00> : vector<8x128xf32>
    %2 = tpu.matmul %0, %1, %cst {dimension_numbers = #tpu.dot_dimension_numbers<[1], [0], [0], [1], [0, 0, 1, 1], [], []>} : vector<8x128xf32>, vector<128x128xf32>, vector<8x128xf32> -> vector<8x128xf32>
    %c0_3 = arith.constant 0 : index
    %c0_4 = arith.constant 0 : index
    %3 = vector.load %arg3[%c0_3, %c0_4] : memref<1x128xf32, #tpu.memory_space<vmem>>, vector<1x128xf32>
    %4 = vector.broadcast %3 : vector<1x128xf32> to vector<8x128xf32>
    %5 = arith.addf %2, %4 : vector<8x128xf32>
    %6 = arith.negf %5 : vector<8x128xf32>
    %7 = math.exp %6 : vector<8x128xf32>
    %cst_5 = arith.constant 1.000000e+00 : f32
    %8 = vector.broadcast %cst_5 : f32 to vector<8x128xf32>
    %9 = arith.addf %8, %7 : vector<8x128xf32>
    %10 = arith.divf %8, %9 : vector<8x128xf32>
    %c0_6 = arith.constant 0 : index
    %c0_7 = arith.constant 0 : index
    %11 = vector.load %arg4[%c0_6, %c0_7] : memref<128x128xf32, #tpu.memory_space<vmem>>, vector<128x128xf32>
    %cst_8 = arith.constant dense<0.000000e+00> : vector<8x128xf32>
    %12 = tpu.matmul %10, %11, %cst_8 {dimension_numbers = #tpu.dot_dimension_numbers<[1], [0], [0], [1], [0, 0, 1, 1], [], []>} : vector<8x128xf32>, vector<128x128xf32>, vector<8x128xf32> -> vector<8x128xf32>
    %c0_9 = arith.constant 0 : index
    %c0_10 = arith.constant 0 : index
    %13 = vector.load %arg5[%c0_9, %c0_10] : memref<1x128xf32, #tpu.memory_space<vmem>>, vector<1x128xf32>
    %14 = vector.broadcast %13 : vector<1x128xf32> to vector<8x128xf32>
    %15 = arith.addf %12, %14 : vector<8x128xf32>
    %16 = arith.negf %15 : vector<8x128xf32>
    %17 = math.exp %16 : vector<8x128xf32>
    %cst_11 = arith.constant 1.000000e+00 : f32
    %18 = vector.broadcast %cst_11 : f32 to vector<8x128xf32>
    %19 = arith.addf %18, %17 : vector<8x128xf32>
    %20 = arith.divf %18, %19 : vector<8x128xf32>
    %c0_12 = arith.constant 0 : index
    %c0_13 = arith.constant 0 : index
    %21 = vector.load %arg6[%c0_12, %c0_13] : memref<8x128xf32, #tpu.memory_space<vmem>>, vector<8x128xf32>
    tpu.vector_store %arg6[%c0_12, %c0_13], %20 {strides = array<i32>} : memref<8x128xf32, #tpu.memory_space<vmem>>, vector<8x128xf32>,
    return
  }
  func.func @transform_0(%arg0: i32) -> (i32, i32) {
    %c0_i32 = arith.constant 0 : i32
    %c0_i32_0 = arith.constant 0 : i32
    return %arg0, %c0_i32 : i32, i32
  }
  func.func @transform_1(%arg0: i32) -> (i32, i32) {
    %c0_i32 = arith.constant 0 : i32
    %c0_i32_0 = arith.constant 0 : i32
    %c0_i32_1 = arith.constant 0 : i32
    return %c0_i32, %c0_i32_0 : i32, i32
  }
  func.func @transform_2(%arg0: i32) -> (i32, i32) {
    %c0_i32 = arith.constant 0 : i32
    %c0_i32_0 = arith.constant 0 : i32
    %c0_i32_1 = arith.constant 0 : i32
    return %c0_i32, %c0_i32_0 : i32, i32
  }
  func.func @transform_3(%arg0: i32) -> (i32, i32) {
    %c0_i32 = arith.constant 0 : i32
    %c0_i32_0 = arith.constant 0 : i32
    %c0_i32_1 = arith.constant 0 : i32
    return %c0_i32, %c0_i32_0 : i32, i32
  }
  func.func @transform_4(%arg0: i32) -> (i32, i32) {
    %c0_i32 = arith.constant 0 : i32
    %c0_i32_0 = arith.constant 0 : i32
    %c0_i32_1 = arith.constant 0 : i32
    return %c0_i32, %c0_i32_0 : i32, i32
  }
  func.func @transform_5(%arg0: i32) -> (i32, i32) {
    %c0_i32 = arith.constant 0 : i32
    %c0_i32_0 = arith.constant 0 : i32
    return %arg0, %c0_i32 : i32, i32
  }
}

</mosaic_0001>

<bundles_post_ra>
// kernel: mlp_forward.1
= control target key start
LH: loop header
LB: loop body
LE: loop exit
PB: predicated region body
PF: predicated region fallthrough
CT: control target
= control target key end

     0   :  { %v391_v0 = vmov 0.0|0.0   ;;  %vm392_vm0 = vmmov 0   ;;  %v393_v4 = vmov 0.0   ;;  %s548_s1 = inlined_call_operand.vmem [shape: f32[128,128], index: 1, kind: input, shape index: {}]   ;;  %s549_s3 = inlined_call_operand.vmem [shape: f32[128,128], index: 3, kind: input, shape index: {}]   ;;  %s550_s0 = inlined_call_operand.vmem [shape: f32[8,128], index: 0, kind: input, shape index: {}]   ;;  %s551_s2 = inlined_call_operand.vmem [shape: f32[1,128], index: 2, kind: input, shape index: {}]   ;;  %s552_s4 = inlined_call_operand.vmem [shape: f32[1,128], index: 4, kind: input, shape index: {}]   ;;  %s553_s5 = inlined_call_operand.vmem [shape: f32[8,128], index: 5, kind: output, shape index: {}]  }
   0x1   :  { %332 = vmatprep.subr.bf16.mxu0 %v391_v0  ;;  %v21_v1 = vld [vmem:[%s548_s1] sm:$0xff]  ;;  %v22_v2 = vld [vmem:[%s548_s1 + $0x8] sm:$0xff]  ;;  %v23_v3 = vld [vmem:[%s548_s1 + $0x10] sm:$0xff]  ;;  %294 = vmatprep.mubr.msk.f32.mxu0 %vm392_vm0, %v393_v4 }
   0x2   :  { %v333_v5 = vpack.c.bf16 %v22_v2, %v21_v1  ;;  %v24_v6 = vld [vmem:[%s548_s1 + $0x18] sm:$0xff]  ;;  %356 = vmatprep.subr.bf16.mxu1 %v391_v0  ;;  %329 = vmatprep.mubr.msk.f32.mxu1 %vm392_vm0, %v393_v4  ;;  %v25_v8 = vld [vmem:[%s548_s1 + $0x20] sm:$0xff]  ;;  %v26_v9 = vld [vmem:[%s548_s1 + $0x28] sm:$0xff] }
   0x3   :  { %v336_v7 = vpack.c.bf16 %v24_v6, %v23_v3  ;;  %v120_v10 = vld [vmem:[%s549_s3] sm:$0xff]  ;;  %v121_v11 = vld [vmem:[%s549_s3 + $0x8] sm:$0xff]  ;;  %v339_v12 = vpack.c.bf16 %v26_v9, %v25_v8  ;;  %v27_v14 = vld [vmem:[%s548_s1 + $0x30] sm:$0xff] }
   0x4   :  { %334 = vmatpush3.bf16.msra.mxu0 %v333_v5  ;;  %v357_v13 = vpack.c.bf16 %v121_v11, %v120_v10  ;;  %v28_v15 = vld [vmem:[%s548_s1 + $0x38] sm:$0xff]  ;;  %v29_v17 = vld [vmem:[%s548_s1 + $0x40] sm:$0xff]  ;;  %v30_v18 = vld [vmem:[%s548_s1 + $0x48] sm:$0xff] }
   0x5   :  { %335 = vmatprep.subr.bf16.mxu0 %v391_v0  ;;  %v342_v16 = vpack.c.bf16 %v28_v15, %v27_v14  ;;  %v345_v19 = vpack.c.bf16 %v30_v18, %v29_v17  ;;  %v31_v20 = vld [vmem:[%s548_s1 + $0x50] sm:$0xff]  ;;  %v32_v21 = vld [vmem:[%s548_s1 + $0x58] sm:$0xff]  ;;  %v33_v23 = vld [vmem:[%s548_s1 + $0x60] sm:$0xff] }
   0x6   :  { %358 = vmatpush3.bf16.msra.mxu1 %v357_v13  ;;  %v348_v22 = vpack.c.bf16 %v32_v21, %v31_v20  ;;  %v34_v24 = vld [vmem:[%s548_s1 + $0x68] sm:$0xff]  ;;  %v35_v26 = vld [vmem:[%s548_s1 + $0x70] sm:$0xff]  ;;  %v36_v27 = vld [vmem:[%s548_s1 + $0x78] sm:$0xff] }
   0x7   :  { %359 = vmatprep.subr.bf16.mxu1 %v391_v0  ;;  %v351_v25 = vpack.c.bf16 %v34_v24, %v33_v23  ;;  %v354_v28 = vpack.c.bf16 %v36_v27, %v35_v26  ;;  %v20_v29 = vld [vmem:[%s550_s0] sm:$0xff]  ;;  %v122_v30 = vld [vmem:[%s549_s3 + $0x10] sm:$0xff]  ;;  %v123_v31 = vld [vmem:[%s549_s3 + $0x18] sm:$0xff] }
   0x8   :  { %337 = vmatpush3.bf16.msra.mxu0 %v336_v7  ;;  %v360_v32 = vpack.c.bf16 %v123_v31, %v122_v30  ;;  %v124_v33 = vld [vmem:[%s549_s3 + $0x20] sm:$0xff]  ;;  %v125_v34 = vld [vmem:[%s549_s3 + $0x28] sm:$0xff]  ;;  %v126_v36 = vld [vmem:[%s549_s3 + $0x30] sm:$0xff] }
   0x9   :  { %338 = vmatprep.subr.bf16.mxu0 %v391_v0  ;;  %v363_v35 = vpack.c.bf16 %v125_v34, %v124_v33  ;;  %v127_v37 = vld [vmem:[%s549_s3 + $0x38] sm:$0xff]  ;;  %v128_v39 = vld [vmem:[%s549_s3 + $0x40] sm:$0xff]  ;;  %v129_v40 = vld [vmem:[%s549_s3 + $0x48] sm:$0xff] }
   0xa   :  { %361 = vmatpush3.bf16.msra.mxu1 %v360_v32  ;;  %v366_v38 = vpack.c.bf16 %v127_v37, %v126_v36  ;;  %v369_v41 = vpack.c.bf16 %v129_v40, %v128_v39  ;;  %v130_v42 = vld [vmem:[%s549_s3 + $0x50] sm:$0xff]  ;;  %v131_v43 = vld [vmem:[%s549_s3 + $0x58] sm:$0xff]  ;;  %v132_v45 = vld [vmem:[%s549_s3 + $0x60] sm:$0xff] }
   0xb   :  { %362 = vmatprep.subr.bf16.mxu1 %v391_v0  ;;  %v372_v44 = vpack.c.bf16 %v131_v43, %v130_v42  ;;  %v133_v46 = vld [vmem:[%s549_s3 + $0x68] sm:$0xff]  ;;  %v134_v48 = vld [vmem:[%s549_s3 + $0x70] sm:$0xff]  ;;  %v135_v49 = vld [vmem:[%s549_s3 + $0x78] sm:$0xff] }
   0xc   :  { %340 = vmatpush3.bf16.msra.mxu0 %v339_v12  ;;  %v375_v47 = vpack.c.bf16 %v133_v46, %v132_v45  ;;  %v378_v50 = vpack.c.bf16 %v135_v49, %v134_v48  ;;  %v224_v51 = vld [vmem:[%s551_s2] ss:$0 sm:$0xff] }
   0xd   :  { %341 = vmatprep.subr.bf16.mxu0 %v391_v0  ;;  %v226_v59 = vld [vmem:[%s552_s4] ss:$0 sm:$0xff] }
   0xe   :  { %364 = vmatpush3.bf16.msra.mxu1 %v363_v35 }
   0xf   :  { %365 = vmatprep.subr.bf16.mxu1 %v391_v0 }
  0x10   :  { %343 = vmatpush3.bf16.msra.mxu0 %v342_v16 }
  0x11   :  { %344 = vmatprep.subr.bf16.mxu0 %v391_v0 }
  0x12   :  { %367 = vmatpush3.bf16.msra.mxu1 %v366_v38 }
  0x13   :  { %368 = vmatprep.subr.bf16.mxu1 %v391_v0 }
  0x14   :  { %346 = vmatpush3.bf16.msra.mxu0 %v345_v19 }
  0x15   :  { %347 = vmatprep.subr.bf16.mxu0 %v391_v0 }
  0x16   :  { %370 = vmatpush3.bf16.msra.mxu1 %v369_v41 }
  0x17   :  { %371 = vmatprep.subr.bf16.mxu1 %v391_v0 }
  0x18   :  { %349 = vmatpush3.bf16.msra.mxu0 %v348_v22 }
  0x19   :  { %350 = vmatprep.subr.bf16.mxu0 %v391_v0 }
  0x1a   :  { %373 = vmatpush3.bf16.msra.mxu1 %v372_v44 }
  0x1b   :  { %374 = vmatprep.subr.bf16.mxu1 %v391_v0 }
  0x1c   :  { %352 = vmatpush3.bf16.msra.mxu0 %v351_v25 }
  0x1d   :  { %353 = vmatprep.subr.bf16.mxu0 %v391_v0 }
  0x1e   :  { %376 = vmatpush3.bf16.msra.mxu1 %v375_v47 }
  0x1f   :  { %377 = vmatprep.subr.bf16.mxu1 %v391_v0 }
  0x20   :  { %355 = vmatpush3.bf16.msra.mxu0 %v354_v28 }
  0x22   :  { %379 = vmatpush3.bf16.msra.mxu1 %v378_v50 }
  0x23   :  { %295 = vmatmul.mubr.f32.vlgmr.msra.gmra.mrb[0].mxu0 %v20_v29 }
  0xf6   :  { %v110_v52 = vpop.f32.mrb[0].mxu0 }
  0xf7   :  { %v111_v53 = vadd.f32 %v224_v51, %v110_v52  ;;  %v296_v54 = vpop.f32.mrb[1].mxu0 }
  0xf9   :  { %v225_v55 = vmul.f32 -1.442695, %v111_v53 }
  0xfb   :  { %383 = vpow2.f32 %v225_v55 }
 0x105   :  { %v384_v56 = vpop.eup %383 }
 0x106   :  { %v117_v57 = vadd.f32 1.0, %v384_v56 }
 0x108   :  { %385 = vrcp.f32 %v117_v57 }
 0x112   :  { %v386_v58 = vpop.eup %385 }
 0x113   :  { %330 = vmatmul.mubr.f32.vlgmr.msra.gmra.mrb[0].mxu1 %v386_v58 }
 0x1e6   :  { %v209_v60 = vpop.f32.mrb[0].mxu1 }
 0x1e7   :  { %v210_v61 = vadd.f32 %v226_v59, %v209_v60  ;;  %v331_v62 = vpop.f32.mrb[1].mxu1 }
 0x1e9   :  { %v227_v63 = vmul.f32 -1.442695, %v210_v61 }
 0x1eb   :  { %387 = vpow2.f32 %v227_v63 }
 0x1f5   :  { %v388_v0 = vpop.eup %387 }
 0x1f6   :  { %v216_v1 = vadd.f32 1.0, %v388_v0 }
 0x1f8   :  { %389 = vrcp.f32 %v216_v1 }
 0x202   :  { %v390_v2 = vpop.eup %389 }
 0x203   :  { %219 = vst [vmem:[%s553_s5] sm:$0xff] %v390_v2 }

</bundles_post_ra>
